<compile_context>
chip_gen: v5e
topology: v5e:2x2
jax: 0.10.0
libtpu: 0.0.40
codegen_flags: <defaults>
</compile_context>

<pallas_src>
import jax
import jax.numpy as jnp
from jax.experimental import pallas as pl
from jax.experimental.pallas import tpu as pltpu

_LANE = 128


def _make_linear_scale_kernel(scale, bias):
    # scale/bias are fixed module constants (constructor args of LinearScale),
    # so baking them as compile-time immediates is fine: one trace, no SMEM
    # plumbing. If they ever become runtime-varying, pass them as a (2,) SMEM
    # scalar input instead (the SMEM read is fully hidden under HBM streaming).
    def kernel(x_ref, o_ref):
        o_ref[...] = x_ref[...] * scale + bias
    return kernel


def _round_up(x, m):
    return ((x + m - 1) // m) * m


def linear_scale(x, scale, bias, *, target_block_bytes=2 << 20):
    """out = x * scale + bias, elementwise, as a Pallas TPU kernel.

    x: any-rank float array (e.g. NCHW). scale/bias: Python scalars (module
    constants, baked into the kernel).
    """
    orig_shape = x.shape
    dtype = x.dtype
    total = int(x.size)
    if total == 0:
        return x

    itemsize = jnp.dtype(dtype).itemsize
    # Sublane packing granularity per dtype width.
    sublane = {4: 8, 2: 16, 1: 32}.get(itemsize, 8)

    flat = x.reshape(-1)
    rows = -(-total // _LANE)  # cdiv
    padded = rows * _LANE != total
    if padded:
        # Rare path: only the final partial lane-row (< 128 elems) is padded.
        flat = jnp.pad(flat, (0, rows * _LANE - total))
    x2d = flat.reshape(rows, _LANE)

    # Row-block size targeting ~target_block_bytes, multiple of the sublane
    # granularity (satisfies the (8,128) block constraint for any dtype).
    rb_cap = max(
        sublane, (target_block_bytes // (_LANE * itemsize)) // sublane * sublane
    )
    # Don't let blocks shrink below ~512 KiB (still ~85% of HBM roofline).
    rb_min = max(
        sublane, _round_up(-(-(512 * 1024) // (_LANE * itemsize)), sublane)
    )

    if rows <= rb_cap:
        # Small input: one full-array block, one grid step.
        rb = rows
        grid = (1,)
    else:
        rb = rb_cap
        steps = -(-rows // rb)
        # Give the pipeline (and v7x's two TensorCores) some depth for large
        # inputs, without dropping below rb_min-sized blocks.
        min_steps = 8
        if steps < min_steps:
            rb = min(rb_cap,
                     max(rb_min, _round_up(-(-rows // min_steps), sublane)))
        grid = (-(-rows // rb),)

    out2d = pl.pallas_call(
        _make_linear_scale_kernel(float(scale), float(bias)),
        out_shape=jax.ShapeDtypeStruct((rows, _LANE), dtype),
        grid_spec=pltpu.PrefetchScalarGridSpec(
            num_scalar_prefetch=0,
            grid=grid,
            in_specs=[pl.BlockSpec((rb, _LANE), lambda i: (i, 0))],
            out_specs=pl.BlockSpec((rb, _LANE), lambda i: (i, 0)),
        ),
        compiler_params=pltpu.CompilerParams(
            dimension_semantics=("parallel",),
        ),
        cost_estimate=pl.CostEstimate(
            flops=2 * total,
            transcendentals=0,
            bytes_accessed=2 * total * itemsize,
        ),
    )(x2d)

    if padded:
        return out2d.reshape(-1)[:total].reshape(orig_shape)
    return out2d.reshape(orig_shape)


if __name__ == "__main__":
    key = jax.random.PRNGKey(0)

    # Module constants (constructor args of the PyTorch LinearScale module).
    scale_v = 2.5
    bias_v = -0.75

    # Small NCHW input consistent with typical SIREN usage.
    x = jax.random.normal(key, (2, 4, 16, 16), dtype=jnp.float32)

    out = linear_scale(x, scale_v, bias_v)
    out = jax.block_until_ready(out)

    # Reference check in plain JAX.
    ref = x * scale_v + bias_v
    assert out.shape == x.shape and out.dtype == x.dtype
    assert jnp.allclose(out, ref, atol=1e-6, rtol=1e-6)

    print("KERNEL_OK")
</pallas_src>

<mosaic_0001>
module attributes {stable_mosaic.version = 11 : i64} {
  func.func @kernel(%arg0: i32, %arg1: memref<16x128xf32, #tpu.memory_space<vmem>>, %arg2: memref<16x128xf32, #tpu.memory_space<vmem>>) attributes {dimension_semantics = [#tpu.dimension_semantics<parallel>], iteration_bounds = array<i64: 1>, scalar_prefetch = 0 : i64, scratch_operands = 0 : i64, tpu.core_type = #tpu.core_type<tc>, window_params = [{transform_indices = @transform_0, window_bounds = array<i64: 16, 128>}, {transform_indices = @transform_1, window_bounds = array<i64: 16, 128>}]} {
    %c0 = arith.constant 0 : index
    %c0_0 = arith.constant 0 : index
    %0 = vector.load %arg1[%c0, %c0_0] : memref<16x128xf32, #tpu.memory_space<vmem>>, vector<16x128xf32>
    %cst = arith.constant 2.500000e+00 : f32
    %1 = vector.broadcast %cst : f32 to vector<16x128xf32>
    %2 = arith.mulf %0, %1 : vector<16x128xf32>
    %cst_1 = arith.constant -7.500000e-01 : f32
    %3 = vector.broadcast %cst_1 : f32 to vector<16x128xf32>
    %4 = arith.addf %2, %3 : vector<16x128xf32>
    %c0_2 = arith.constant 0 : index
    %c0_3 = arith.constant 0 : index
    %5 = vector.load %arg2[%c0_2, %c0_3] : memref<16x128xf32, #tpu.memory_space<vmem>>, vector<16x128xf32>
    tpu.vector_store %arg2[%c0_2, %c0_3], %4 {strides = array<i32>} : memref<16x128xf32, #tpu.memory_space<vmem>>, vector<16x128xf32>,
    return
  }
  func.func @transform_0(%arg0: i32) -> (i32, i32) {
    %c0_i32 = arith.constant 0 : i32
    %c0_i32_0 = arith.constant 0 : i32
    return %arg0, %c0_i32 : i32, i32
  }
  func.func @transform_1(%arg0: i32) -> (i32, i32) {
    %c0_i32 = arith.constant 0 : i32
    %c0_i32_0 = arith.constant 0 : i32
    return %arg0, %c0_i32 : i32, i32
  }
}

</mosaic_0001>

<bundles_post_ra>
// kernel: tpu_custom_call.1
= control target key start
LH: loop header
LB: loop body
LE: loop exit
PB: predicated region body
PF: predicated region fallthrough
CT: control target
= control target key end

     0   :  { %6 = vsyncpa [#allocation3], 0  ;;  %s128_s0 = inlined_call_operand.hbm [shape: f32[16,128], index: 0, kind: input, shape index: {}]   ;;  %s129_s1 = inlined_call_operand.hbm [shape: f32[16,128], index: 1, kind: output, shape index: {}]  }
   0x1   :  { %7 = vsyncpa [#allocation4], 0  ;;  %s12_s8 = sshll.u32 %s128_s0, 4  ;;  %s108_s9 = smov [#allocation2]   ;;  %s13_s8 = int_to_ptr.hbm [resolvable:$true] %s12_s8 }
   0x2   :  { %s14_s10 = sshll.u32 %s108_s9, 4  ;;  %s109_s11 = smov 128   ;;  %s15_s10 = int_to_ptr.vmem [resolvable:$true] %s14_s10 }
   0x3   :  { %s110_s12 = smov 8  }
   0x4   :  { %20 = dma.hbm_to_vmem [thread:$0]  %s13_s8, 256, %s15_s10, [#allocation3], %s109_s11, %s109_s11, %s110_s12  }
   0x5   :  { %104 = dma.done.wait [#allocation3], 256  }
   0x6   :  { %105 = vsyncadd [#allocation3], 4294967040  ;;  %v25_v0 = vld [vmem:[#allocation2] sm:$0xff]  ;;  %v26_v1 = vld [vmem:[#allocation2 + $0x8] sm:$0xff]  ;;  %s111_s13 = smov [#allocation5]   ;;  %s39_s17 = sshll.u32 %s129_s1, 4  ;;  %s40_s17 = int_to_ptr.hbm [resolvable:$true] %s39_s17 }
   0x7   :  { %v27_v2 = vmul.f32 2.5, %v25_v0  ;;  %v28_v3 = vmul.f32 2.5, %v26_v1  ;;  %s37_s14 = sshll.u32 %s111_s13, 4  ;;  %s38_s14 = int_to_ptr.vmem [resolvable:$true] %s37_s14 }
   0x9   :  { %v29_v4 = vadd.f32 -0.75, %v27_v2  ;;  %v30_v5 = vadd.f32 -0.75, %v28_v3 }
   0xb   :  { %31 = vst [vmem:[#allocation5] sm:$0xff] %v29_v4 }
   0xc   :  { %32 = vst [vmem:[#allocation5 + $0x8] sm:$0xff] %v30_v5 }
   0xd   :  { %45 = dma.vmem_to_hbm [thread:$0]  %s38_s14, 256, %s40_s17, [#allocation4], %s109_s11, %s109_s11, %s110_s12  }
   0xe   :  { %106 = dma.done.wait [#allocation4], 256  }
   0xf   :  { %107 = vsyncadd [#allocation4], 4294967040 }
  0x10   :  { %50 = vsyncpa [#allocation3], 1 }
  0x11   :  { %51 = vsyncpa [#allocation4], 1 }

</bundles_post_ra>
